<compile_context>
chip_gen: v7x
topology: tpu7x:2x2x1
jax: 0.10.0
libtpu: 0.0.40
codegen_flags: <defaults>
</compile_context>

<pallas_src>
import functools
from typing import NamedTuple, Optional

import jax
import jax.numpy as jnp
import numpy as np
from jax.experimental import pallas as pl
from jax.experimental.pallas import tpu as pltpu


class ModelInterfaceOptions(NamedTuple):
    threshold: float = 0.5
    set_lower_bound: bool = True
    set_upper_bound: bool = True
    snap_value: Optional[float] = 1.0


def _round_up(x: int, m: int) -> int:
    return (x + m - 1) // m * m


def _logic_classifier_kernel(
    xT_ref, wT_ref, bT_ref,       # x^T streams per batch tile; W^T/b^T resident
    out_ref,                      # [4*C_sub, block_b] lane-dense output slab
    *, num_classes, c_sub, threshold, snap_value,
    set_lower_bound, set_upper_bound,
):
    # ---- wrapped model: logits^T[C_sub, tb] = W^T @ x^T + b^T (MXU) ----------
    logits = jnp.dot(
        wT_ref[...], xT_ref[...], preferred_element_type=jnp.float32
    ) + bT_ref[...]

    # ---- mask padded class rows (only if C was not a multiple of 8) ----------
    if c_sub > num_classes:
        row = jax.lax.broadcasted_iota(jnp.int32, logits.shape, 0)
        ml = jnp.where(row < num_classes, logits, jnp.float32(-1e30))
    else:
        ml = logits

    # ---- softmax over the class (sublane) axis, numerically stable -----------
    m = jnp.max(ml, axis=0, keepdims=True)
    e = jnp.exp(ml - m)
    denom = jnp.sum(e, axis=0, keepdims=True)
    probs = e * pl.reciprocal(denom, approx=True)     # divide -> EUP slot

    # ---- exact threshold: probs > t  <=>  e > t * denom  (no approx recip) ---
    cond = e > jnp.float32(threshold) * denom

    # ---- ModelInterfaceOptions bound logic (VPU selects) ---------------------
    zeros = jnp.zeros_like(probs)
    ones = jnp.ones_like(probs)
    if snap_value is not None:
        snap = jnp.float32(snap_value)
        lower = jnp.where(cond, snap, jnp.float32(0.0)) if set_lower_bound else zeros
        if set_upper_bound:
            if float(snap_value) == 1.0:
                upper = ones                           # where(cond, 1, 1) == 1
            else:
                upper = jnp.where(cond, snap, jnp.float32(1.0))
        else:
            upper = ones
    else:
        lower = jnp.where(cond, probs, zeros) if set_lower_bound else zeros
        upper = jnp.where(cond, probs, ones) if set_upper_bound else ones

    # ---- four sublane-aligned slice stores (no concat temp) ------------------
    C = c_sub
    out_ref[0 * C:1 * C, :] = logits.astype(out_ref.dtype)
    out_ref[1 * C:2 * C, :] = probs.astype(out_ref.dtype)
    out_ref[2 * C:3 * C, :] = lower.astype(out_ref.dtype)
    out_ref[3 * C:4 * C, :] = upper.astype(out_ref.dtype)


def make_logic_integrated_classifier_forward(w, b, opts: ModelInterfaceOptions,
                                             *, block_b: int = 512):
    """Build a jitted forward for fixed (constant) model params + options.

    w: [H, C] f32, b: [1, C] f32.  Returned forward(x [B, H]) ->
    (logits [B, C], probs [B, C], lower [B, C], upper [B, C]).
    """
    assert block_b % 128 == 0 and block_b > 0
    H, C = w.shape
    assert b.shape == (1, C)
    C_sub = _round_up(max(C, 8), 8)          # class axis lives on sublanes now

    # Pre-transpose / pad the constant model parameters ONCE (not per call).
    w_t = jnp.pad(jnp.transpose(w), ((0, C_sub - C), (0, 0)))   # [C_sub, H]
    b_t = jnp.pad(jnp.transpose(b), ((0, C_sub - C), (0, 0)))   # [C_sub, 1]

    kernel = functools.partial(
        _logic_classifier_kernel,
        num_classes=C,
        c_sub=C_sub,
        threshold=float(opts.threshold),
        snap_value=None if opts.snap_value is None else float(opts.snap_value),
        set_lower_bound=bool(opts.set_lower_bound),
        set_upper_bound=bool(opts.set_upper_bound),
    )

    @jax.jit
    def forward(x):
        B, Hx = x.shape
        assert Hx == H
        tb = min(block_b, _round_up(B, 128))     # batch tile (lane axis)
        B_pad = _round_up(B, tb)
        x_t = jnp.pad(jnp.transpose(x), ((0, 0), (0, B_pad - B)))   # [H, B_pad]

        out = pl.pallas_call(
            kernel,
            out_shape=jax.ShapeDtypeStruct((4 * C_sub, B_pad), jnp.float32),
            grid=(B_pad // tb,),
            in_specs=[
                pl.BlockSpec((H, tb), lambda i: (0, i)),       # x^T streams per tile
                pl.BlockSpec((C_sub, H), lambda i: (0, 0)),    # W^T resident in VMEM
                pl.BlockSpec((C_sub, 1), lambda i: (0, 0)),    # b^T resident in VMEM
            ],
            out_specs=pl.BlockSpec((4 * C_sub, tb), lambda i: (0, i)),
            compiler_params=pltpu.CompilerParams(
                dimension_semantics=("parallel",),   # shard batch tiles across TCs
            ),
        )(x_t, w_t, b_t)

        # Layout plumbing back to the user-facing [B, C] convention.
        logits = jnp.transpose(out[0:C, :B])
        probs = jnp.transpose(out[C_sub:C_sub + C, :B])
        lower = jnp.transpose(out[2 * C_sub:2 * C_sub + C, :B])
        upper = jnp.transpose(out[3 * C_sub:3 * C_sub + C, :B])
        return logits, probs, lower, upper

    return forward


if __name__ == "__main__":
    # Small shapes implied by the forward: hidden=32, num_classes=16.
    # Batch 200 requests; block_b=128 -> 2 parallel grid steps (exercises grid).
    B, H, C = 200, 32, 16
    key = jax.random.PRNGKey(0)
    kx, kw, kb = jax.random.split(key, 3)

    x = jax.random.normal(kx, (B, H), dtype=jnp.float32)
    # Deterministic "model" parameters (synthetic, no checkpoint load).
    w = jax.random.normal(kw, (H, C), dtype=jnp.float32) * 0.1
    b = jax.random.normal(kb, (1, C), dtype=jnp.float32) * 0.01

    # Pure-JAX reference for the wrapped model + softmax.
    ref_logits = x @ w + b
    ref_probs = jax.nn.softmax(ref_logits, axis=1)

    # ---- config 1: snap bounds (snap_value != 1 so 'upper' is non-trivial) ----
    opts = ModelInterfaceOptions(threshold=0.06, set_lower_bound=True,
                                 set_upper_bound=True, snap_value=0.9)
    fwd = make_logic_integrated_classifier_forward(w, b, opts, block_b=128)
    logits, probs, lower, upper = jax.block_until_ready(fwd(x))

    assert jnp.allclose(logits, ref_logits, atol=1e-4), "logits mismatch"
    # approx EUP reciprocal -> relaxed tolerance on probabilities
    assert jnp.allclose(probs, ref_probs, atol=2e-3, rtol=2e-3), "probs mismatch"

    ref_cond = ref_probs > opts.threshold
    # Only assert where the reference probability is not borderline w.r.t. the
    # threshold (kernel vs reference logits differ by ~1e-6).
    safe = jnp.abs(ref_probs - opts.threshold) > 1e-4
    ref_lower = jnp.where(ref_cond, opts.snap_value, 0.0)
    ref_upper = jnp.where(ref_cond, opts.snap_value, 1.0)
    assert jnp.allclose(jnp.where(safe, lower, ref_lower), ref_lower), "lower mismatch"
    assert jnp.allclose(jnp.where(safe, upper, ref_upper), ref_upper), "upper mismatch"

    # ---- config 2: no snap value, no upper bound (other kernel branches) ------
    opts2 = ModelInterfaceOptions(threshold=0.06, set_lower_bound=True,
                                  set_upper_bound=False, snap_value=None)
    fwd2 = make_logic_integrated_classifier_forward(w, b, opts2, block_b=256)
    _, probs2, lower2, upper2 = jax.block_until_ready(fwd2(x))
    ref_lower2 = jnp.where(ref_cond, ref_probs, 0.0)
    assert jnp.allclose(jnp.where(safe, lower2, ref_lower2), ref_lower2,
                        atol=2e-3, rtol=2e-3), "lower (no-snap) mismatch"
    assert jnp.allclose(upper2, jnp.ones_like(upper2)), "upper (no-upper-bound) mismatch"

    # ---- host-side glue mirroring the PyTorch module --------------------------
    # The original module squeezes to a 1-D probability vector (batch == 1);
    # emit facts for request 0 of the batch.  Pull device arrays to host ONCE.
    lower_h = np.asarray(lower[0])
    upper_h = np.asarray(upper[0])
    class_names = [f"class_{i}" for i in range(C)]
    identifier = "classifier"
    # TODO(synk): PyReason `Fact` objects (and the optional
    # limit_classification_output_classes topk/id2label filtering and printing)
    # are host-side Python glue with no Pallas equivalent; emit strings instead.
    facts = [
        f"{name}({identifier}) : [{lo:.3f}, {up:.3f}]"
        for name, lo, up in zip(class_names, lower_h, upper_h)
    ]
    assert len(facts) == C

    print("KERNEL_OK")
</pallas_src>

<mosaic_0001>
module attributes {stable_mosaic.version = 11 : i64} {
  func.func @_logic_classifier_kernel(%arg0: i32, %arg1: memref<32x128xf32, #tpu.memory_space<vmem>>, %arg2: memref<16x32xf32, #tpu.memory_space<vmem>>, %arg3: memref<16x1xf32, #tpu.memory_space<vmem>>, %arg4: memref<64x128xf32, #tpu.memory_space<vmem>>) attributes {dimension_semantics = [#tpu.dimension_semantics<parallel>], iteration_bounds = array<i64: 2>, scalar_prefetch = 0 : i64, scratch_operands = 0 : i64, tpu.core_type = #tpu.core_type<tc>, window_params = [{transform_indices = @transform_0, window_bounds = array<i64: 32, 128>}, {pipeline_mode = #tpu.pipeline_mode<synchronous>, transform_indices = @transform_1, window_bounds = array<i64: 16, 32>}, {pipeline_mode = #tpu.pipeline_mode<synchronous>, transform_indices = @transform_2, window_bounds = array<i64: 16, 1>}, {transform_indices = @transform_3, window_bounds = array<i64: 64, 128>}]} {
    %c0 = arith.constant 0 : index
    %c0_0 = arith.constant 0 : index
    %0 = vector.load %arg2[%c0, %c0_0] : memref<16x32xf32, #tpu.memory_space<vmem>>, vector<16x32xf32>
    %c0_1 = arith.constant 0 : index
    %c0_2 = arith.constant 0 : index
    %1 = vector.load %arg1[%c0_1, %c0_2] : memref<32x128xf32, #tpu.memory_space<vmem>>, vector<32x128xf32>
    %cst = arith.constant dense<0.000000e+00> : vector<16x128xf32>
    %2 = tpu.matmul %0, %1, %cst {dimension_numbers = #tpu.dot_dimension_numbers<[1], [0], [0], [1], [0, 0, 1, 1], [], []>} : vector<16x32xf32>, vector<32x128xf32>, vector<16x128xf32> -> vector<16x128xf32>
    %c0_3 = arith.constant 0 : index
    %c0_4 = arith.constant 0 : index
    %3 = vector.load %arg3[%c0_3, %c0_4] : memref<16x1xf32, #tpu.memory_space<vmem>>, vector<16x1xf32>
    %4 = vector.broadcast %3 : vector<16x1xf32> to vector<16x128xf32>
    %5 = arith.addf %2, %4 : vector<16x128xf32>
    %cst_5 = arith.constant dense<0xFF800000> : vector<128xf32>
    %6 = vector.multi_reduction <maximumf>, %5, %cst_5 [0] : vector<16x128xf32> to vector<128xf32>
    %7 = vector.shape_cast %6 : vector<128xf32> to vector<1x128xf32>
    %8 = vector.broadcast %7 : vector<1x128xf32> to vector<16x128xf32>
    %9 = arith.subf %5, %8 : vector<16x128xf32>
    %10 = math.exp %9 : vector<16x128xf32>
    %cst_6 = arith.constant dense<0.000000e+00> : vector<128xf32>
    %11 = vector.multi_reduction <add>, %10, %cst_6 [0] : vector<16x128xf32> to vector<128xf32>
    %12 = vector.shape_cast %11 : vector<128xf32> to vector<1x128xf32>
    %13 = tpu.reciprocal %12 {approx = true} : vector<1x128xf32> -> vector<1x128xf32>
    %14 = vector.broadcast %13 : vector<1x128xf32> to vector<16x128xf32>
    %15 = arith.mulf %10, %14 : vector<16x128xf32>
    %cst_7 = arith.constant 6.000000e-02 : f32
    %16 = vector.broadcast %cst_7 : f32 to vector<1x128xf32>
    %17 = arith.mulf %16, %12 : vector<1x128xf32>
    %18 = vector.broadcast %17 : vector<1x128xf32> to vector<16x128xf32>
    %19 = arith.cmpf ogt, %10, %18 : vector<16x128xf32>
    %cst_8 = arith.constant 0.899999976 : f32
    %cst_9 = arith.constant 0.000000e+00 : f32
    %20 = vector.broadcast %cst_8 : f32 to vector<16x128xf32>
    %21 = vector.broadcast %cst_9 : f32 to vector<16x128xf32>
    %22 = arith.select %19, %20, %21 : vector<16x128xi1>, vector<16x128xf32>
    %cst_10 = arith.constant 0.899999976 : f32
    %cst_11 = arith.constant 1.000000e+00 : f32
    %23 = vector.broadcast %cst_10 : f32 to vector<16x128xf32>
    %24 = vector.broadcast %cst_11 : f32 to vector<16x128xf32>
    %25 = arith.select %19, %23, %24 : vector<16x128xi1>, vector<16x128xf32>
    %c0_12 = arith.constant 0 : index
    %c0_13 = arith.constant 0 : index
    %26 = vector.load %arg4[%c0_12, %c0_13] : memref<64x128xf32, #tpu.memory_space<vmem>>, vector<16x128xf32>
    tpu.vector_store %arg4[%c0_12, %c0_13], %5 {strides = array<i32>} : memref<64x128xf32, #tpu.memory_space<vmem>>, vector<16x128xf32>,
    %c16 = arith.constant 16 : index
    %c0_14 = arith.constant 0 : index
    %27 = vector.load %arg4[%c16, %c0_14] : memref<64x128xf32, #tpu.memory_space<vmem>>, vector<16x128xf32>
    tpu.vector_store %arg4[%c16, %c0_14], %15 {strides = array<i32>} : memref<64x128xf32, #tpu.memory_space<vmem>>, vector<16x128xf32>,
    %c32 = arith.constant 32 : index
    %c0_15 = arith.constant 0 : index
    %28 = vector.load %arg4[%c32, %c0_15] : memref<64x128xf32, #tpu.memory_space<vmem>>, vector<16x128xf32>
    tpu.vector_store %arg4[%c32, %c0_15], %22 {strides = array<i32>} : memref<64x128xf32, #tpu.memory_space<vmem>>, vector<16x128xf32>,
    %c48 = arith.constant 48 : index
    %c0_16 = arith.constant 0 : index
    %29 = vector.load %arg4[%c48, %c0_16] : memref<64x128xf32, #tpu.memory_space<vmem>>, vector<16x128xf32>
    tpu.vector_store %arg4[%c48, %c0_16], %25 {strides = array<i32>} : memref<64x128xf32, #tpu.memory_space<vmem>>, vector<16x128xf32>,
    return
  }
  func.func @transform_0(%arg0: i32) -> (i32, i32) {
    %c0_i32 = arith.constant 0 : i32
    %c0_i32_0 = arith.constant 0 : i32
    return %c0_i32, %arg0 : i32, i32
  }
  func.func @transform_1(%arg0: i32) -> (i32, i32) {
    %c0_i32 = arith.constant 0 : i32
    %c0_i32_0 = arith.constant 0 : i32
    %c0_i32_1 = arith.constant 0 : i32
    return %c0_i32, %c0_i32_0 : i32, i32
  }
  func.func @transform_2(%arg0: i32) -> (i32, i32) {
    %c0_i32 = arith.constant 0 : i32
    %c0_i32_0 = arith.constant 0 : i32
    %c0_i32_1 = arith.constant 0 : i32
    return %c0_i32, %c0_i32_0 : i32, i32
  }
  func.func @transform_3(%arg0: i32) -> (i32, i32) {
    %c0_i32 = arith.constant 0 : i32
    %c0_i32_0 = arith.constant 0 : i32
    return %c0_i32, %arg0 : i32, i32
  }
}

</mosaic_0001>

<bundles_post_ra>
// kernel: forward.1
= control target key start
LH: loop header
LB: loop body
LE: loop exit
PB: predicated region body
PF: predicated region fallthrough
CT: control target
= control target key end

     0   :  { %s595_s12 = smov 0   ;;  %s597_s13 = smov 0   ;;  %s687_s0 = inlined_call_operand.vmem [shape: f32[32,256], index: 0, kind: input, shape index: {}]   ;;  %s688_s1 = inlined_call_operand.vmem [shape: f32[16,32], index: 1, kind: input, shape index: {}]   ;;  %s689_s2 = inlined_call_operand.vmem [shape: f32[16,1], index: 2, kind: input, shape index: {}]   ;;  %s690_s3 = inlined_call_operand.vmem [shape: f32[64,256], index: 3, kind: output, shape index: {}]  }
   0x1   :  { %s599_s14 = smov 0  }
   0x2 LB: > { %s474_s15 = sadd.s32 4294967295, %s570_s14   ;;  %s612_s16 = sadd.s32 1, %s570_s14   ;;  %s570_s14 = sphi %s599_s14, %s694_s14   ;;  %s566_s13 = sphi %s597_s13, %s693_s13   ;;  %s562_s12 = sphi %s595_s12, %s692_s12  }
   0x3   : > { %s17_s17 = ssub.s32 %s570_s14, %s612_s16  ;;  %s20_s18 = sadd.s32 1, %s566_s13 }
   0x4   : > { %p18_p0 = scmp.eq.s32.totalorder %s17_s17, 0  ;;  %p27_p1 = scmp.ne.s32.totalorder %s566_s13, %s562_s12 }
   0x5   : > { %p28_p2 = scmp.eq.s32.totalorder %s570_s14, 0  ;;  %p99_p3 = scmp.eq.s32.totalorder %s474_s15, 1 }
   0x6   : > { %s623_s19 = scalar_select %p18_p0, %s566_s13, %s20_s18  }
   0x7   : > { %p29_p4 = por %p28_p2, %p27_p1  ;;  %p625_p5 = por %p99_p3, %p27_p1 }
   0x8   : > { %p477_p6 = scmp.ge.s32.totalorder %s570_s14, 2 }
   0xa   : > { %127 = sbr.rel (%p477_p6) target bundleno = 24 (0x18), region = 24 }
  0x11   : > { %130 = sbr.rel (!%p29_p4) target bundleno = 24 (0x18), region = 28  ;;  %s132_s21 = sand.u32 (%p29_p4), 1, %s566_s13  }
  0x12   : > { %s479_s22 = sshll.u32 (%p29_p4), %s570_s14, 3  ;;  %s478_s23 = sshll.u32 (%p29_p4), %s132_s21, 5 }
  0x13   : > { %s136_s26 = scalar_lea.vmem (%p29_p4), %s687_s0, %s479_s22  ;;  %s134_s27 = scalar_lea.vmem (%p29_p4), [#allocation2], %s478_s23 }
  0x14   : > { %v170_v0 = vld [vmem:[%s136_s26] sm:$0xff] (%p29_p4)  ;;  %v172_v1 = vld [vmem:[%s136_s26 + $0x10] sm:$0xff] (%p29_p4) }
  0x15   : > { %v174_v2 = vld [vmem:[%s136_s26 + $0x20] sm:$0xff] (%p29_p4)  ;;  %171 = vst [vmem:[%s134_s27] sm:$0xff] (%p29_p4), %v170_v0  ;;  %173 = vst [vmem:[%s134_s27 + $0x8] sm:$0xff] (%p29_p4), %v172_v1  ;;  %v176_v3 = vld [vmem:[%s136_s26 + $0x30] sm:$0xff] (%p29_p4) }
  0x16   : > { %175 = vst [vmem:[%s134_s27 + $0x10] sm:$0xff] (%p29_p4), %v174_v2  ;;  %177 = vst [vmem:[%s134_s27 + $0x18] sm:$0xff] (%p29_p4), %v176_v3 }
  0x18 PF: > { %p480_p7 = scmp.ge.s32.totalorder %s570_s14, 1  ;;  %p182_p8 = scmp.lt.s32.totalorder %s570_s14, 3 }
  0x1a   : > { %p183_p9 = pnand %p480_p7, %p182_p8 }
  0x1b   : > { %s189_s28 = sand.u32 (!%p183_p9), 1, %s562_s12   ;;  %v211_v4 = vld [vmem:[%s688_s1] sm:$0xff] (!%p183_p9)  ;;  %vm229_vm0 = vcmask (!%p183_p9), 261120   ;;  %v572_v6 = vmov (!%p183_p9), 0   ;;  %v218_v7 = vld [vmem:[%s689_s2 + $0x8] sm:$0xff] (!%p183_p9)  ;;  %v573_v42 = vmov (!%p183_p9), 0.0  }
  0x1c   : > { %186 = sbr.rel (%p183_p9) target bundleno = 322 (0x142), region = 66  ;;  %v217_v5 = vld [vmem:[%s689_s2] sm:$0xff] (!%p183_p9)  ;;  %s481_s6 = sshll.u32 (!%p183_p9), %s189_s28, 5  ;;  %503 = vmatprep.mubr.msk.f32.mxu0 (!%p183_p9), %vm229_vm0, %v211_v4  ;;  %541 = vset.pattern.permute.xlu0 (!%p183_p9), %v572_v6  ;;  %v212_v14 = vld [vmem:[%s688_s1 + $0x8] sm:$0xff] (!%p183_p9)  ;;  %v574_v45 = vmov (!%p183_p9), 1.0  }
  0x1d   : > { %221 = vperm.xlu0 (!%p183_p9), %541, %v217_v5   ;;  %s191_s9 = scalar_lea.vmem (!%p183_p9), [#allocation2], %s481_s6  ;;  %s482_s12 = sshll.u32 (!%p183_p9), %s189_s28, 6 }
  0x1e   : > { %v213_v8 = vld [vmem:[%s191_s9] sm:$0xff] (!%p183_p9)  ;;  %v214_v9 = vld [vmem:[%s191_s9 + $0x8] sm:$0xff] (!%p183_p9)  ;;  %v215_v10 = vld [vmem:[%s191_s9 + $0x10] sm:$0xff] (!%p183_p9)  ;;  %s652_s17 = scalar_lea.vmem (!%p183_p9), [#allocation3], %s482_s12 }
  0x1f   : > { %v506_v11 = vpack.c.bf16 (!%p183_p9), %v214_v9, %v213_v8  ;;  %v216_v12 = vld [vmem:[%s191_s9 + $0x18] sm:$0xff] (!%p183_p9) }
  0x20   : > { %v510_v13 = vpack.c.bf16 (!%p183_p9), %v216_v12, %v215_v10 }
  0x21   : > { %507 = vmatprep.subr.bf16.mxu0 (!%p183_p9), %v506_v11  ;;  %226 = vperm.xlu0 (!%p183_p9), %541, %v218_v7  }
  0x22   : > { %509 = vmatpush3.bf16.msra.mxu0 (!%p183_p9), %v506_v11 }
  0x23   : > { %511 = vmatprep.subr.bf16.mxu0 %v510_v13  ;;  %s486_s18 = sshll.u32 (%p625_p5), %s474_s15, 3 }
  0x24   : > { %s357_s23 = scalar_lea.vmem (%p625_p5), %s690_s3, %s486_s18 }
  0x26   : > { %513 = vmatpush3.bf16.msra.mxu0 %v510_v13 }
  0x29   : > { %504 = vmatmul.mubr.msk.f32.vlgmr.msra.gmra.mrb[0].mxu0 %vm229_vm0, %v212_v14 }
  0x9c   : > { %v222_v15 = vpop.permute.xlu0 %221 }
  0xa0   : > { %v227_v16 = vpop.permute.xlu0 %226 }
  0xfc   : > { %v505_v17 = vpop.f32.mrb[0].mxu0 }
  0xfd   : > { %v308_v18 = vadd.f32 %v505_v17, %v227_v16  ;;  %v302_v19 = vpop.f32.mrb[1].mxu0 }
  0xfe   : > { %v303_v20 = vadd.f32 %v302_v19, %v222_v15 }
  0xff   : > { %342 = vst [vmem:[%s652_s17 + $0x8] sm:$0xff] %v308_v18 }
 0x100   : > { %v311_v21 = vmax.f32 %v303_v20, %v308_v18  ;;  %341 = vst [vmem:[%s652_s17] sm:$0xff] %v303_v20 }
 0x102   : > { %v312_v22 = vrot.slane %v311_v21, 4 }
 0x104   : > { %v313_v23 = vmax.f32 %v311_v21, %v312_v22 }
 0x106   : > { %v314_v24 = vrot.slane %v313_v23, 2  ;;  %v401_v52 = vld [vmem:[%s652_s17 + $0x8] sm:$0xff] (%p625_p5) }
 0x107   : > { %v399_v51 = vld [vmem:[%s652_s17] sm:$0xff] (%p625_p5)  ;;  %402 = vst [vmem:[%s357_s23 + $0x10] sm:$0xff] (%p625_p5), %v401_v52 }
 0x108   : > { %v315_v25 = vmax.f32 %v313_v23, %v314_v24  ;;  %400 = vst [vmem:[%s357_s23] sm:$0xff] (%p625_p5), %v399_v51 }
 0x10a   : > { %v316_v26 = vrot.slane %v315_v25, 1 }
 0x10c   : > { %v317_v27 = vmax.f32 %v315_v25, %v316_v26 }
 0x10e   : > { %v318_v28 = vsub.f32 %v303_v20, %v317_v27  ;;  %v319_v29 = vsub.f32 %v308_v18, %v317_v27 }
 0x110   : > { %v320_v30 = vmul.f32 1.442695, %v318_v28  ;;  %v322_v31 = vmul.f32 1.442695, %v319_v29 }
 0x112   : > { %542 = vpow2.f32 %v320_v30 }
 0x113   : > { %544 = vpow2.f32 %v322_v31 }
 0x11c   : > { %v543_v32 = vpop.eup %542 }
 0x11d   : > { %v545_v33 = vpop.eup %544 }
 0x11e   : > { %v324_v34 = vadd.f32 %v545_v33, %v543_v32 }
 0x120   : > { %v325_v35 = vrot.slane %v324_v34, 4 }
 0x122   : > { %v326_v36 = vadd.f32 %v325_v35, %v324_v34 }
 0x124   : > { %v327_v37 = vrot.slane %v326_v36, 2 }
 0x126   : > { %v328_v38 = vadd.f32 %v327_v37, %v326_v36 }
 0x128   : > { %v329_v39 = vrot.slane %v328_v38, 1 }
 0x12a   : > { %v330_v40 = vadd.f32 %v329_v39, %v328_v38 }
 0x12c   : > { %546 = vrcp.f32 %v330_v40  ;;  %v334_v41 = vmul.f32 0.06, %v330_v40 }
 0x12e   : > { %vm335_vm1 = vcmp.gt.f32.partialorder %v543_v32, %v334_v41  ;;  %vm336_vm2 = vcmp.gt.f32.partialorder %v545_v33, %v334_v41 }
 0x12f   : > { %v337_v43 = vsel %vm335_vm1, 0.9, %v573_v42  ;;  %v338_v44 = vsel %vm336_vm2, 0.9, %v573_v42  ;;  %v339_v46 = vsel %vm335_vm1, 0.9, %v574_v45 }
 0x130   : > { %v340_v47 = vsel %vm336_vm2, 0.9, %v574_v45  ;;  %345 = vst [vmem:[%s652_s17 + $0x20] sm:$0xff] %v337_v43  ;;  %346 = vst [vmem:[%s652_s17 + $0x28] sm:$0xff] %v338_v44 }
 0x131   : > { %347 = vst [vmem:[%s652_s17 + $0x30] sm:$0xff] %v339_v46  ;;  %348 = vst [vmem:[%s652_s17 + $0x38] sm:$0xff] %v340_v47 }
 0x133   : > { %355 = sbr.rel (!%p625_p5) target bundleno = 322 (0x142), region = 74 }
 0x136   : > { %v547_v48 = vpop.eup %546 }
 0x137   : > { %v332_v49 = vmul.f32 %v547_v48, %v543_v32  ;;  %v333_v50 = vmul.f32 %v547_v48, %v545_v33  ;;  %v407_v55 = vld [vmem:[%s652_s17 + $0x20] sm:$0xff] (%p625_p5)  ;;  %v409_v56 = vld [vmem:[%s652_s17 + $0x28] sm:$0xff] (%p625_p5) }
 0x138   : > { %408 = vst [vmem:[%s357_s23 + $0x40] sm:$0xff] (%p625_p5), %v407_v55  ;;  %410 = vst [vmem:[%s357_s23 + $0x50] sm:$0xff] (%p625_p5), %v409_v56  ;;  %v411_v57 = vld [vmem:[%s652_s17 + $0x30] sm:$0xff] (%p625_p5)  ;;  %v413_v58 = vld [vmem:[%s652_s17 + $0x38] sm:$0xff] (%p625_p5) }
 0x139   : > { %343 = vst [vmem:[%s652_s17 + $0x10] sm:$0xff] %v332_v49  ;;  %344 = vst [vmem:[%s652_s17 + $0x18] sm:$0xff] %v333_v50 }
 0x13a   : > { %412 = vst [vmem:[%s357_s23 + $0x60] sm:$0xff] %v411_v57  ;;  %414 = vst [vmem:[%s357_s23 + $0x70] sm:$0xff] %v413_v58 }
 0x140   : > { %v403_v53 = vld [vmem:[%s652_s17 + $0x10] sm:$0xff]  ;;  %v405_v54 = vld [vmem:[%s652_s17 + $0x18] sm:$0xff] }
 0x141   : > { %404 = vst [vmem:[%s357_s23 + $0x20] sm:$0xff] %v403_v53  ;;  %406 = vst [vmem:[%s357_s23 + $0x30] sm:$0xff] %v405_v54 }
 0x142 PF: > { %p10_p10 = scmp.ge.s32.totalorder %s612_s16, 4   ;;  %s692_s12 = smov %s566_s13 }
 0x143   : > { %s693_s13 = smov %s623_s19  ;;  %s694_s14 = smov %s612_s16 }
 0x144   :  { %12 = sbr.rel (!%p10_p10) target bundleno = 2 (0x2), region = 143 }

</bundles_post_ra>
